<compile_context>
chip_gen: v6e
topology: v6e:2x2x1
jax: 0.10.0
libtpu: 0.0.40
codegen_flags: <defaults>
</compile_context>

<pallas_src>
import math

import jax
import jax.numpy as jnp
from jax import lax
from jax.experimental import pallas as pl
from jax.experimental.pallas import tpu as pltpu

LN_EPS = 1e-5            # PyTorch nn.LayerNorm default eps
_LANE = 128
_SUBLANE = 8
_GELU_C = math.sqrt(2.0 / math.pi)

USE_TANH_GELU = True     # True: EUP-routed tanh approx (fast); False: erf-exact
MXU_DTYPE = jnp.bfloat16  # matmul operand dtype (accumulation stays f32)


def _round_up(x, m):
    return (x + m - 1) // m * m


def _layernorm(h, gamma, beta):
    mean = jnp.mean(h, axis=-1, keepdims=True)
    centered = h - mean
    var = jnp.mean(centered * centered, axis=-1, keepdims=True)
    return centered * lax.rsqrt(var + LN_EPS) * gamma + beta


def _gelu(h):
    if USE_TANH_GELU:
        # tanh-approx GELU: the transcendental lands on the EUP slot, freeing
        # the VALU (the bottleneck unit for this kernel). ~1e-3 deviation from
        # PyTorch's erf-exact default.
        return 0.5 * h * (1.0 + jnp.tanh(_GELU_C * (h + 0.044715 * (h * h * h))))
    # erf-exact (PyTorch nn.GELU default) — polynomial on the VPU, slower.
    return 0.5 * h * (1.0 + lax.erf(h * (1.0 / math.sqrt(2.0))))


# ----------------------------------------------------------------------------
# Kernel
# ----------------------------------------------------------------------------
def peak_head_kernel(x_ref, w1_ref, p1_ref, w2_ref, p2_ref, wh_ref, bh_ref,
                     out_ref):
    """One batch tile: shared MLP + fused (packed) head matmul.

    x_ref:  [tile_b, in_pad]  bf16 (streamed)
    w*_ref: bf16 weights (resident); p1/p2: [3, hidden] f32 rows = (b, gamma, beta)
    wh_ref: [hidden, head_pad] = [wp|wl|wa|0-pad];  bh_ref: [1, head_pad]
    """
    # shared_net block 1: Linear (bf16 MXU, f32 accum) -> LayerNorm -> GELU
    # (Dropout == identity in eval mode)
    h = jnp.dot(x_ref[...], w1_ref[...],
                preferred_element_type=jnp.float32) + p1_ref[0:1, :]
    h = _layernorm(h, p1_ref[1:2, :], p1_ref[2:3, :])
    h = _gelu(h)

    # shared_net block 2: Linear -> LayerNorm -> GELU  (Dropout == identity)
    h = jnp.dot(h.astype(w2_ref.dtype), w2_ref[...],
                preferred_element_type=jnp.float32) + p2_ref[0:1, :]
    h = _layernorm(h, p2_ref[1:2, :], p2_ref[2:3, :])
    h = _gelu(h)

    # fused task heads: one lane-dense 128-wide matmul, one unmasked store.
    out_ref[...] = (
        jnp.dot(h.astype(wh_ref.dtype), wh_ref[...],
                preferred_element_type=jnp.float32) + bh_ref[...]
    ).astype(out_ref.dtype)


# ----------------------------------------------------------------------------
# Parameter packing / wrapper
# ----------------------------------------------------------------------------
def pack_params(params, num_peaks, mxu_dtype=MXU_DTYPE):
    """Consolidate the module's parameters into the kernel's packed layout."""
    input_dim, _hidden = params["w1"].shape
    in_pad = _round_up(input_dim, _LANE)          # lane-dense K for matmul #1
    head_width = 3 * num_peaks
    head_pad = _round_up(max(head_width, _LANE), _LANE)

    w1 = jnp.pad(params["w1"], ((0, in_pad - input_dim), (0, 0)))
    p1 = jnp.concatenate([params["b1"], params["g1"], params["be1"]], axis=0)
    p2 = jnp.concatenate([params["b2"], params["g2"], params["be2"]], axis=0)
    wh = jnp.concatenate([params["wp"], params["wl"], params["wa"]], axis=1)
    bh = jnp.concatenate([params["bp"], params["bl"], params["ba"]], axis=1)
    wh = jnp.pad(wh, ((0, 0), (0, head_pad - head_width)))
    bh = jnp.pad(bh, ((0, 0), (0, head_pad - head_width)))

    return {
        "w1": w1.astype(mxu_dtype), "p1": p1.astype(jnp.float32),
        "w2": params["w2"].astype(mxu_dtype), "p2": p2.astype(jnp.float32),
        "wh": wh.astype(mxu_dtype), "bh": bh.astype(jnp.float32),
    }


def _vmem_limit_bytes(tile_b, in_pad, hidden, head_pad):
    """Honest VMEM request computed from the real footprint (with headroom)."""
    stream = 3 * tile_b * (in_pad * 2 + head_pad * 4)           # x (bf16) + out (f32), depth 3
    weights = 2 * (in_pad * hidden + hidden * hidden + hidden * head_pad)
    small = 4 * (2 * _SUBLANE * hidden + _SUBLANE * head_pad)   # padded p1/p2/bh
    temps = 8 * tile_b * max(hidden, head_pad) * 4              # f32 intermediates
    est = stream + weights + small + temps
    return int(min(112 * 2**20, max(16 * 2**20, 2 * est)))


def _build_specs(tile_b, in_pad, hidden, head_pad, use_hints):
    """BlockSpecs; pipeline-depth hints are applied only when supported."""
    def spec(shape, index_map, buffers):
        if use_hints and hasattr(pl, "Buffered"):
            try:
                return pl.BlockSpec(shape, index_map,
                                    pipeline_mode=pl.Buffered(buffers))
            except TypeError:
                pass
        return pl.BlockSpec(shape, index_map)

    const = lambda i: (0, 0)   # weights/params resident in VMEM across the grid
    in_specs = [
        spec((tile_b, in_pad), lambda i: (i, 0), 3),   # x (streamed, depth 3)
        spec((in_pad, hidden), const, 1),              # w1       (resident)
        spec((3, hidden), const, 1),                   # b1|g1|be1
        spec((hidden, hidden), const, 1),              # w2
        spec((3, hidden), const, 1),                   # b2|g2|be2
        spec((hidden, head_pad), const, 1),            # packed head W
        spec((1, head_pad), const, 1),                 # packed head b
    ]
    out_spec = spec((tile_b, head_pad), lambda i: (i, 0), 3)
    return in_specs, out_spec


def _split_outputs(packed_out, batch, num_peaks):
    packed_out = packed_out[:batch].astype(jnp.float32)
    presence = packed_out[:, 0:num_peaks]
    latencies = packed_out[:, num_peaks:2 * num_peaks]
    amplitudes = packed_out[:, 2 * num_peaks:3 * num_peaks]
    return {
        "presence_logits": presence,
        "latencies": latencies,
        "amplitudes": amplitudes,
        "presence_probs": jax.nn.sigmoid(presence),  # trivial, done in XLA
    }


def peak_detection_head(x, packed, num_peaks, tile_b=None,
                        out_dtype=jnp.float32):
    """x: [batch, input_dim] float32. packed: output of pack_params()."""
    batch, input_dim = x.shape
    in_pad, hidden = packed["w1"].shape
    head_pad = packed["wh"].shape[1]
    mxu_dtype = packed["w1"].dtype

    # Lane-dense K: zero-pad input features (w1 rows are already padded), then
    # stream x as bf16 (halves the input DMA bytes).
    if input_dim != in_pad:
        x = jnp.pad(x, ((0, 0), (0, in_pad - input_dim)))
    x = x.astype(mxu_dtype)

    # Batch tiling: big tiles amortize the ~0.35us/grid-step overhead; cap so
    # the grid has >= 2 steps when there is more than one minimal tile of work
    # (lets the "parallel" axis shard across v7x's two TensorCores).
    batch_pad0 = _round_up(max(batch, _SUBLANE), _SUBLANE)
    if tile_b is None:
        tile_b = 1024
    tile_b = max(_SUBLANE, _round_up(min(tile_b, batch_pad0), _SUBLANE))
    if batch_pad0 > _SUBLANE:
        tile_b = min(tile_b, _round_up(pl.cdiv(batch_pad0, 2), _SUBLANE))
    batch_pad = _round_up(batch_pad0, tile_b)
    if batch_pad != batch:
        x = jnp.pad(x, ((0, batch_pad - batch), (0, 0)))

    grid = (batch_pad // tile_b,)

    def run(use_hints):
        in_specs, out_spec = _build_specs(tile_b, in_pad, hidden, head_pad,
                                          use_hints)
        return pl.pallas_call(
            peak_head_kernel,
            out_shape=jax.ShapeDtypeStruct((batch_pad, head_pad), out_dtype),
            grid=grid,
            in_specs=in_specs,
            out_specs=out_spec,
            compiler_params=pltpu.CompilerParams(
                dimension_semantics=("parallel",),
                vmem_limit_bytes=_vmem_limit_bytes(tile_b, in_pad, hidden,
                                                   head_pad),
            ),
        )(x, packed["w1"], packed["p1"], packed["w2"], packed["p2"],
          packed["wh"], packed["bh"])

    try:
        packed_out = run(use_hints=True)
    except Exception:
        # Portability fallback: drop the pipeline-depth hints (older Pallas /
        # Mosaic versions without pipeline_mode support).
        packed_out = run(use_hints=False)

    return _split_outputs(packed_out, batch, num_peaks)


# ----------------------------------------------------------------------------
# Synthetic parameters + references
# ----------------------------------------------------------------------------
def init_params(key, input_dim, hidden_dim, num_peaks):
    """Deterministic synthetic parameters with the module's shapes/init."""
    ks = jax.random.split(key, 10)

    def lin(kw, kb, fan_in, fan_out):
        bound = 1.0 / math.sqrt(fan_in)
        w = jax.random.uniform(kw, (fan_in, fan_out), jnp.float32, -bound, bound)
        b = jax.random.uniform(kb, (1, fan_out), jnp.float32, -bound, bound)
        return w, b

    w1, b1 = lin(ks[0], ks[1], input_dim, hidden_dim)
    w2, b2 = lin(ks[2], ks[3], hidden_dim, hidden_dim)
    wp, bp = lin(ks[4], ks[5], hidden_dim, num_peaks)
    wl, bl = lin(ks[6], ks[7], hidden_dim, num_peaks)
    wa, ba = lin(ks[8], ks[9], hidden_dim, num_peaks)

    return {
        "w1": w1, "b1": b1,
        "g1": jnp.ones((1, hidden_dim), jnp.float32),
        "be1": jnp.zeros((1, hidden_dim), jnp.float32),
        "w2": w2, "b2": b2,
        "g2": jnp.ones((1, hidden_dim), jnp.float32),
        "be2": jnp.zeros((1, hidden_dim), jnp.float32),
        "wp": wp, "bp": bp,
        "wl": wl, "bl": bl,
        "wa": wa, "ba": ba,
    }


def _reference_exact(x, p):
    """Pure-JAX f32 / erf-exact reference of the PyTorch forward (eval mode)."""
    gelu = lambda h: 0.5 * h * (1.0 + lax.erf(h * (1.0 / math.sqrt(2.0))))
    h = gelu(_layernorm(x @ p["w1"] + p["b1"], p["g1"], p["be1"]))
    h = gelu(_layernorm(h @ p["w2"] + p["b2"], p["g2"], p["be2"]))
    pres = h @ p["wp"] + p["bp"]
    return {
        "presence_logits": pres,
        "latencies": h @ p["wl"] + p["bl"],
        "amplitudes": h @ p["wa"] + p["ba"],
        "presence_probs": jax.nn.sigmoid(pres),
    }


def _reference_kernel_numerics(x, packed, num_peaks):
    """Pure-JAX reference with the SAME numerics as the kernel (bf16 MXU,
    tanh GELU) — used for a tight consistency check."""
    mdt = packed["w1"].dtype
    in_pad = packed["w1"].shape[0]
    xp = jnp.pad(x, ((0, 0), (0, in_pad - x.shape[1]))).astype(mdt)
    h = jnp.dot(xp, packed["w1"], preferred_element_type=jnp.float32) + packed["p1"][0:1]
    h = _gelu(_layernorm(h, packed["p1"][1:2], packed["p1"][2:3]))
    h = jnp.dot(h.astype(mdt), packed["w2"],
                preferred_element_type=jnp.float32) + packed["p2"][0:1]
    h = _gelu(_layernorm(h, packed["p2"][1:2], packed["p2"][2:3]))
    out = jnp.dot(h.astype(mdt), packed["wh"],
                  preferred_element_type=jnp.float32) + packed["bh"]
    return _split_outputs(out, x.shape[0], num_peaks)


if __name__ == "__main__":
    # TODO(synk): Dropout(0.1) in shared_net is treated as eval-mode identity.
    # Module defaults: hidden_dim=128, num_peaks=3; small batch/input for demo.
    # batch=30 exercises batch padding; input_dim=64 exercises lane padding;
    # the default tile_b logic yields a 2-step ("parallel") grid.
    batch, input_dim, hidden_dim, num_peaks = 30, 64, 128, 3

    key = jax.random.PRNGKey(0)
    kx, kp = jax.random.split(key)
    x = jax.random.normal(kx, (batch, input_dim), jnp.float32)
    params = init_params(kp, input_dim, hidden_dim, num_peaks)
    packed = pack_params(params, num_peaks)

    out = peak_detection_head(x, packed, num_peaks)
    jax.block_until_ready(out)

    ref_same = _reference_kernel_numerics(x, packed, num_peaks)
    ref_exact = _reference_exact(x, params)
    for name in ("presence_logits", "latencies", "amplitudes", "presence_probs"):
        assert out[name].shape == (batch, num_peaks), name
        # 1) Tight check against a reference with identical numerics.
        assert jnp.allclose(out[name], ref_same[name], atol=2e-3, rtol=2e-3), name
        # 2) Looser check against the f32 / erf-exact PyTorch semantics
        #    (bf16 MXU + tanh GELU deviate at the ~1e-3..1e-2 level).
        assert jnp.allclose(out[name], ref_exact[name], atol=5e-2, rtol=5e-2), name

    print("KERNEL_OK")
</pallas_src>

<mosaic_0001>
module attributes {stable_mosaic.version = 11 : i64} {
  func.func @peak_head_kernel(%arg0: i32, %arg1: memref<16x128xbf16, #tpu.memory_space<vmem>>, %arg2: memref<128x128xbf16, #tpu.memory_space<vmem>>, %arg3: memref<3x128xf32, #tpu.memory_space<vmem>>, %arg4: memref<128x128xbf16, #tpu.memory_space<vmem>>, %arg5: memref<3x128xf32, #tpu.memory_space<vmem>>, %arg6: memref<128x128xbf16, #tpu.memory_space<vmem>>, %arg7: memref<1x128xf32, #tpu.memory_space<vmem>>, %arg8: memref<16x128xf32, #tpu.memory_space<vmem>>) attributes {dimension_semantics = [#tpu.dimension_semantics<parallel>], iteration_bounds = array<i64: 2>, scalar_prefetch = 0 : i64, scratch_operands = 0 : i64, tpu.core_type = #tpu.core_type<tc>, window_params = [{transform_indices = @transform_0, window_bounds = array<i64: 16, 128>}, {pipeline_mode = #tpu.pipeline_mode<synchronous>, transform_indices = @transform_1, window_bounds = array<i64: 128, 128>}, {pipeline_mode = #tpu.pipeline_mode<synchronous>, transform_indices = @transform_2, window_bounds = array<i64: 3, 128>}, {pipeline_mode = #tpu.pipeline_mode<synchronous>, transform_indices = @transform_3, window_bounds = array<i64: 128, 128>}, {pipeline_mode = #tpu.pipeline_mode<synchronous>, transform_indices = @transform_4, window_bounds = array<i64: 3, 128>}, {pipeline_mode = #tpu.pipeline_mode<synchronous>, transform_indices = @transform_5, window_bounds = array<i64: 128, 128>}, {pipeline_mode = #tpu.pipeline_mode<synchronous>, transform_indices = @transform_6, window_bounds = array<i64: 1, 128>}, {transform_indices = @transform_7, window_bounds = array<i64: 16, 128>}]} {
    %c0 = arith.constant 0 : index
    %c0_0 = arith.constant 0 : index
    %0 = vector.load %arg1[%c0, %c0_0] : memref<16x128xbf16, #tpu.memory_space<vmem>>, vector<16x128xbf16>
    %c0_1 = arith.constant 0 : index
    %c0_2 = arith.constant 0 : index
    %1 = vector.load %arg2[%c0_1, %c0_2] : memref<128x128xbf16, #tpu.memory_space<vmem>>, vector<128x128xbf16>
    %cst = arith.constant dense<0.000000e+00> : vector<16x128xf32>
    %2 = tpu.matmul %0, %1, %cst {dimension_numbers = #tpu.dot_dimension_numbers<[1], [0], [0], [1], [0, 0, 1, 1], [], []>} : vector<16x128xbf16>, vector<128x128xbf16>, vector<16x128xf32> -> vector<16x128xf32>
    %c0_3 = arith.constant 0 : index
    %c0_4 = arith.constant 0 : index
    %3 = vector.load %arg3[%c0_3, %c0_4] : memref<3x128xf32, #tpu.memory_space<vmem>>, vector<1x128xf32>
    %4 = vector.broadcast %3 : vector<1x128xf32> to vector<16x128xf32>
    %5 = arith.addf %2, %4 : vector<16x128xf32>
    %c1 = arith.constant 1 : index
    %c0_5 = arith.constant 0 : index
    %6 = vector.load %arg3[%c1, %c0_5] : memref<3x128xf32, #tpu.memory_space<vmem>>, vector<1x128xf32>
    %c2 = arith.constant 2 : index
    %c0_6 = arith.constant 0 : index
    %7 = vector.load %arg3[%c2, %c0_6] : memref<3x128xf32, #tpu.memory_space<vmem>>, vector<1x128xf32>
    %cst_7 = arith.constant dense<0.000000e+00> : vector<16xf32>
    %8 = vector.multi_reduction <add>, %5, %cst_7 [1] : vector<16x128xf32> to vector<16xf32>
    %9 = vector.shape_cast %8 : vector<16xf32> to vector<16x1xf32>
    %cst_8 = arith.constant 1.280000e+02 : f32
    %10 = vector.broadcast %cst_8 : f32 to vector<16x1xf32>
    %11 = arith.divf %9, %10 : vector<16x1xf32>
    %12 = vector.broadcast %11 : vector<16x1xf32> to vector<16x128xf32>
    %13 = arith.subf %5, %12 : vector<16x128xf32>
    %14 = arith.mulf %13, %13 : vector<16x128xf32>
    %cst_9 = arith.constant dense<0.000000e+00> : vector<16xf32>
    %15 = vector.multi_reduction <add>, %14, %cst_9 [1] : vector<16x128xf32> to vector<16xf32>
    %16 = vector.shape_cast %15 : vector<16xf32> to vector<16x1xf32>
    %cst_10 = arith.constant 1.280000e+02 : f32
    %17 = vector.broadcast %cst_10 : f32 to vector<16x1xf32>
    %18 = arith.divf %16, %17 : vector<16x1xf32>
    %cst_11 = arith.constant 9.99999974E-6 : f32
    %19 = vector.broadcast %cst_11 : f32 to vector<16x1xf32>
    %20 = arith.addf %18, %19 : vector<16x1xf32>
    %21 = math.rsqrt %20 : vector<16x1xf32>
    %22 = vector.broadcast %21 : vector<16x1xf32> to vector<16x128xf32>
    %23 = arith.mulf %13, %22 : vector<16x128xf32>
    %24 = vector.broadcast %6 : vector<1x128xf32> to vector<16x128xf32>
    %25 = arith.mulf %23, %24 : vector<16x128xf32>
    %26 = vector.broadcast %7 : vector<1x128xf32> to vector<16x128xf32>
    %27 = arith.addf %25, %26 : vector<16x128xf32>
    %cst_12 = arith.constant 5.000000e-01 : f32
    %28 = vector.broadcast %cst_12 : f32 to vector<16x128xf32>
    %29 = arith.mulf %28, %27 : vector<16x128xf32>
    %30 = arith.mulf %27, %27 : vector<16x128xf32>
    %31 = arith.mulf %30, %27 : vector<16x128xf32>
    %cst_13 = arith.constant 4.471500e-02 : f32
    %32 = vector.broadcast %cst_13 : f32 to vector<16x128xf32>
    %33 = arith.mulf %32, %31 : vector<16x128xf32>
    %34 = arith.addf %27, %33 : vector<16x128xf32>
    %cst_14 = arith.constant 0.797884583 : f32
    %35 = vector.broadcast %cst_14 : f32 to vector<16x128xf32>
    %36 = arith.mulf %35, %34 : vector<16x128xf32>
    %37 = math.tanh %36 : vector<16x128xf32>
    %cst_15 = arith.constant 1.000000e+00 : f32
    %38 = vector.broadcast %cst_15 : f32 to vector<16x128xf32>
    %39 = arith.addf %38, %37 : vector<16x128xf32>
    %40 = arith.mulf %29, %39 : vector<16x128xf32>
    %41 = arith.truncf %40 : vector<16x128xf32> to vector<16x128xbf16>
    %c0_16 = arith.constant 0 : index
    %c0_17 = arith.constant 0 : index
    %42 = vector.load %arg4[%c0_16, %c0_17] : memref<128x128xbf16, #tpu.memory_space<vmem>>, vector<128x128xbf16>
    %cst_18 = arith.constant dense<0.000000e+00> : vector<16x128xf32>
    %43 = tpu.matmul %41, %42, %cst_18 {dimension_numbers = #tpu.dot_dimension_numbers<[1], [0], [0], [1], [0, 0, 1, 1], [], []>} : vector<16x128xbf16>, vector<128x128xbf16>, vector<16x128xf32> -> vector<16x128xf32>
    %c0_19 = arith.constant 0 : index
    %c0_20 = arith.constant 0 : index
    %44 = vector.load %arg5[%c0_19, %c0_20] : memref<3x128xf32, #tpu.memory_space<vmem>>, vector<1x128xf32>
    %45 = vector.broadcast %44 : vector<1x128xf32> to vector<16x128xf32>
    %46 = arith.addf %43, %45 : vector<16x128xf32>
    %c1_21 = arith.constant 1 : index
    %c0_22 = arith.constant 0 : index
    %47 = vector.load %arg5[%c1_21, %c0_22] : memref<3x128xf32, #tpu.memory_space<vmem>>, vector<1x128xf32>
    %c2_23 = arith.constant 2 : index
    %c0_24 = arith.constant 0 : index
    %48 = vector.load %arg5[%c2_23, %c0_24] : memref<3x128xf32, #tpu.memory_space<vmem>>, vector<1x128xf32>
    %cst_25 = arith.constant dense<0.000000e+00> : vector<16xf32>
    %49 = vector.multi_reduction <add>, %46, %cst_25 [1] : vector<16x128xf32> to vector<16xf32>
    %50 = vector.shape_cast %49 : vector<16xf32> to vector<16x1xf32>
    %cst_26 = arith.constant 1.280000e+02 : f32
    %51 = vector.broadcast %cst_26 : f32 to vector<16x1xf32>
    %52 = arith.divf %50, %51 : vector<16x1xf32>
    %53 = vector.broadcast %52 : vector<16x1xf32> to vector<16x128xf32>
    %54 = arith.subf %46, %53 : vector<16x128xf32>
    %55 = arith.mulf %54, %54 : vector<16x128xf32>
    %cst_27 = arith.constant dense<0.000000e+00> : vector<16xf32>
    %56 = vector.multi_reduction <add>, %55, %cst_27 [1] : vector<16x128xf32> to vector<16xf32>
    %57 = vector.shape_cast %56 : vector<16xf32> to vector<16x1xf32>
    %cst_28 = arith.constant 1.280000e+02 : f32
    %58 = vector.broadcast %cst_28 : f32 to vector<16x1xf32>
    %59 = arith.divf %57, %58 : vector<16x1xf32>
    %cst_29 = arith.constant 9.99999974E-6 : f32
    %60 = vector.broadcast %cst_29 : f32 to vector<16x1xf32>
    %61 = arith.addf %59, %60 : vector<16x1xf32>
    %62 = math.rsqrt %61 : vector<16x1xf32>
    %63 = vector.broadcast %62 : vector<16x1xf32> to vector<16x128xf32>
    %64 = arith.mulf %54, %63 : vector<16x128xf32>
    %65 = vector.broadcast %47 : vector<1x128xf32> to vector<16x128xf32>
    %66 = arith.mulf %64, %65 : vector<16x128xf32>
    %67 = vector.broadcast %48 : vector<1x128xf32> to vector<16x128xf32>
    %68 = arith.addf %66, %67 : vector<16x128xf32>
    %cst_30 = arith.constant 5.000000e-01 : f32
    %69 = vector.broadcast %cst_30 : f32 to vector<16x128xf32>
    %70 = arith.mulf %69, %68 : vector<16x128xf32>
    %71 = arith.mulf %68, %68 : vector<16x128xf32>
    %72 = arith.mulf %71, %68 : vector<16x128xf32>
    %cst_31 = arith.constant 4.471500e-02 : f32
    %73 = vector.broadcast %cst_31 : f32 to vector<16x128xf32>
    %74 = arith.mulf %73, %72 : vector<16x128xf32>
    %75 = arith.addf %68, %74 : vector<16x128xf32>
    %cst_32 = arith.constant 0.797884583 : f32
    %76 = vector.broadcast %cst_32 : f32 to vector<16x128xf32>
    %77 = arith.mulf %76, %75 : vector<16x128xf32>
    %78 = math.tanh %77 : vector<16x128xf32>
    %cst_33 = arith.constant 1.000000e+00 : f32
    %79 = vector.broadcast %cst_33 : f32 to vector<16x128xf32>
    %80 = arith.addf %79, %78 : vector<16x128xf32>
    %81 = arith.mulf %70, %80 : vector<16x128xf32>
    %82 = arith.truncf %81 : vector<16x128xf32> to vector<16x128xbf16>
    %c0_34 = arith.constant 0 : index
    %c0_35 = arith.constant 0 : index
    %83 = vector.load %arg6[%c0_34, %c0_35] : memref<128x128xbf16, #tpu.memory_space<vmem>>, vector<128x128xbf16>
    %cst_36 = arith.constant dense<0.000000e+00> : vector<16x128xf32>
    %84 = tpu.matmul %82, %83, %cst_36 {dimension_numbers = #tpu.dot_dimension_numbers<[1], [0], [0], [1], [0, 0, 1, 1], [], []>} : vector<16x128xbf16>, vector<128x128xbf16>, vector<16x128xf32> -> vector<16x128xf32>
    %c0_37 = arith.constant 0 : index
    %c0_38 = arith.constant 0 : index
    %85 = vector.load %arg7[%c0_37, %c0_38] : memref<1x128xf32, #tpu.memory_space<vmem>>, vector<1x128xf32>
    %86 = vector.broadcast %85 : vector<1x128xf32> to vector<16x128xf32>
    %87 = arith.addf %84, %86 : vector<16x128xf32>
    %c0_39 = arith.constant 0 : index
    %c0_40 = arith.constant 0 : index
    %88 = vector.load %arg8[%c0_39, %c0_40] : memref<16x128xf32, #tpu.memory_space<vmem>>, vector<16x128xf32>
    tpu.vector_store %arg8[%c0_39, %c0_40], %87 {strides = array<i32>} : memref<16x128xf32, #tpu.memory_space<vmem>>, vector<16x128xf32>,
    return
  }
  func.func @transform_0(%arg0: i32) -> (i32, i32) {
    %c0_i32 = arith.constant 0 : i32
    %c0_i32_0 = arith.constant 0 : i32
    return %arg0, %c0_i32 : i32, i32
  }
  func.func @transform_1(%arg0: i32) -> (i32, i32) {
    %c0_i32 = arith.constant 0 : i32
    %c0_i32_0 = arith.constant 0 : i32
    %c0_i32_1 = arith.constant 0 : i32
    return %c0_i32, %c0_i32_0 : i32, i32
  }
  func.func @transform_2(%arg0: i32) -> (i32, i32) {
    %c0_i32 = arith.constant 0 : i32
    %c0_i32_0 = arith.constant 0 : i32
    %c0_i32_1 = arith.constant 0 : i32
    return %c0_i32, %c0_i32_0 : i32, i32
  }
  func.func @transform_3(%arg0: i32) -> (i32, i32) {
    %c0_i32 = arith.constant 0 : i32
    %c0_i32_0 = arith.constant 0 : i32
    %c0_i32_1 = arith.constant 0 : i32
    return %c0_i32, %c0_i32_0 : i32, i32
  }
  func.func @transform_4(%arg0: i32) -> (i32, i32) {
    %c0_i32 = arith.constant 0 : i32
    %c0_i32_0 = arith.constant 0 : i32
    %c0_i32_1 = arith.constant 0 : i32
    return %c0_i32, %c0_i32_0 : i32, i32
  }
  func.func @transform_5(%arg0: i32) -> (i32, i32) {
    %c0_i32 = arith.constant 0 : i32
    %c0_i32_0 = arith.constant 0 : i32
    %c0_i32_1 = arith.constant 0 : i32
    return %c0_i32, %c0_i32_0 : i32, i32
  }
  func.func @transform_6(%arg0: i32) -> (i32, i32) {
    %c0_i32 = arith.constant 0 : i32
    %c0_i32_0 = arith.constant 0 : i32
    %c0_i32_1 = arith.constant 0 : i32
    return %c0_i32, %c0_i32_0 : i32, i32
  }
  func.func @transform_7(%arg0: i32) -> (i32, i32) {
    %c0_i32 = arith.constant 0 : i32
    %c0_i32_0 = arith.constant 0 : i32
    return %arg0, %c0_i32 : i32, i32
  }
}

</mosaic_0001>

<bundles_post_ra>
// kernel: tpu_custom_call.1
= control target key start
LH: loop header
LB: loop body
LE: loop exit
PB: predicated region body
PF: predicated region fallthrough
CT: control target
= control target key end

     0   :  { %s1735_s0 = inlined_call_operand.hbm [shape: bf16[32,128], index: 0, kind: input, shape index: {}]   ;;  %s1736_s1 = inlined_call_operand.hbm [shape: bf16[128,128], index: 1, kind: input, shape index: {}]   ;;  %s1737_s2 = inlined_call_operand.hbm [shape: f32[3,128], index: 2, kind: input, shape index: {}]   ;;  %s1738_s3 = inlined_call_operand.hbm [shape: bf16[128,128], index: 3, kind: input, shape index: {}]   ;;  %s1739_s4 = inlined_call_operand.vmem [shape: f32[3,128], index: 4, kind: input, shape index: {}]   ;;  %s1740_s5 = inlined_call_operand.hbm [shape: bf16[128,128], index: 5, kind: input, shape index: {}]   ;;  %s1741_s6 = inlined_call_operand.vmem [shape: f32[1,128], index: 6, kind: input, shape index: {}]   ;;  %s1742_s7 = inlined_call_operand.hbm [shape: f32[32,128], index: 7, kind: output, shape index: {}]  }
   0x1   :  { %1749 = sst [smem:[#allocation16_spill]] %s1736_s1 }
   0x2   :  { %12 = vsyncpa [#allocation3], 0 }
   0x3   :  { %14 = vsyncpa [#allocation3 + $0x1], 0 }
   0x4   :  { %15 = vsyncpa [#allocation6], 0 }
   0x5   :  { %16 = vsyncpa [#allocation9], 0 }
   0x6   :  { %17 = vsyncpa [#allocation4], 0 }
   0x7   :  { %19 = vsyncpa [#allocation4 + $0x1], 0  ;;  %s1469_s24 = smov 0   ;;  %s1471_s25 = smov 0  }
   0x8   :  { %s1473_s26 = smov 0   ;;  %s1475_s27 = smov 0  }
   0x9 LB: > { %s1490_s28 = sadd.s32 4294967295, %s1415_s27   ;;  %s934_s29 = sadd.s32 4294967294, %s1415_s27   ;;  %s1415_s27 = sphi %s1475_s27, %s1772_s27   ;;  %s1411_s26 = sphi %s1473_s26, %s1771_s26   ;;  %s1407_s25 = sphi %s1471_s25, %s1770_s25   ;;  %s1403_s24 = sphi %s1469_s24, %s1769_s24  }
   0xa   : > { %p45_p0 = scmp.ne.s32.totalorder %s1407_s25, %s1403_s24  ;;  %p1743_p1 = scmp.eq.s32.totalorder %s1490_s28, 0 }
   0xb   : > { %p201_p3 = scmp.eq.s32.totalorder %s934_s29, 1  ;;  %p935_p5 = scmp.ge.s32.totalorder %s1415_s27, 1 }
   0xc   : > { %p1499_p4 = por %p1743_p1, %p45_p0  ;;  %p208_p7 = scmp.lt.s32.totalorder %s1415_s27, 3 }
   0xd   : > { %p1504_p6 = por %p201_p3, %p45_p0  ;;  %s1417_s10 = smov [#allocation5]  }
   0xe   : > { %s1750_s30 = scalar_select %p1499_p4, 1, 0 }
   0xf   : > { %s1751_s8 = scalar_select %p1504_p6, 1, 0 }
  0x10   : > { %p1509_p8 = pnand %p935_p5, %p208_p7  ;;  %s220_s11 = sshll.u32 %s1417_s10, 4  ;;  %s221_s11 = int_to_ptr.vmem [resolvable:$true] %s220_s11 }
  0x11   : > { %s1418_s13 = smov [#allocation8]   ;;  %s1419_s15 = smov [#allocation7]  }
  0x12   : > { %s1752_s9 = scalar_select %p1509_p8, 1, 0 }
  0x13   : > { %p1097_p9 = pneg %p1509_p8  ;;  %s244_s14 = sshll.u32 %s1418_s13, 4  ;;  %s245_s14 = int_to_ptr.vmem [resolvable:$true] %s244_s14 }
  0x14   : > { %s234_s16 = sshll.u32 %s1419_s15, 4  ;;  %s1222_s17 = scalar_lea.vmem %s221_s11, 1024  ;;  %s235_s16 = int_to_ptr.vmem [resolvable:$true] %s234_s16 }
  0x15   : > { %p1518_p11 = pnand %p1097_p9, %p1743_p1  ;;  %p1223_p13 = scmp.ne.s32.totalorder %s221_s11, %s1222_s17 }
  0x16   : > { %p1230_p5 = scmp.lt.s32.totalorder %s221_s11, %s221_s11  ;;  %p1231_p7 = scmp.lt.s32.totalorder %s1222_s17, %s1222_s17 }
  0x17   : > { %p1213_p12 = pneg %p1518_p11 }
  0x18   : > { %p1232_p9 = por %p1231_p7, %p1230_p5 }
  0x19   : > { %p1225_p0 = pnand %p1223_p13, %p1213_p12 }
  0x1b   : > { %p1226_p3 = pneg %p1225_p0 }
  0x1d   : > { %p1233_p10 = pnand %p1232_p9, %p1226_p3 }
  0x1f   : > { %1236 = shalt.err (!%p1233_p10)
}
  0x20   : > { %s1744_s18 = smov 64   ;;  %s1745_s19 = smov 4  }
  0x21   : > { %s1754_s1 = sld [smem:[#allocation16_spill]]  ;;  %s1248_s22 = scalar_lea.vmem %s245_s14, 1024 }
  0x22   : > { %p1249_p13 = scmp.ne.s32.totalorder %s245_s14, %s1248_s22  ;;  %p1256_p3 = scmp.lt.s32.totalorder %s245_s14, %s245_s14 }
  0x23   : > { %p1257_p10 = scmp.lt.s32.totalorder %s1248_s22, %s1248_s22 }
  0x24   : > { %p1251_p0 = pnand %p1249_p13, %p1213_p12 }
  0x25   : > { %p1258_p7 = por %p1257_p10, %p1256_p3 }
  0x26   : > { %p1252_p5 = pneg %p1251_p0 }
  0x27   : > { %1100 = dma.hbm_to_vmem [thread:$0]  (!%p1518_p11), %s1754_s1, 1024, %s221_s11, [#allocation6], %s1744_s18, %s1744_s18, %s1745_s19  }
  0x28   : > { %p1259_p9 = pnand %p1258_p7, %p1252_p5 }
  0x2a   : > { %1262 = shalt.err (!%p1259_p9)
}
  0x2b   : > { %1106 = dma.hbm_to_vmem [thread:$0]  (!%p1518_p11), %s1738_s3, 1024, %s245_s14, [#allocation9], %s1744_s18, %s1744_s18, %s1745_s19  }
  0x2c   : > { %s1274_s10 = scalar_lea.vmem %s235_s16, 64  ;;  %p1282_p3 = scmp.lt.s32.totalorder %s235_s16, %s235_s16 }
  0x2d   : > { %p1275_p1 = scmp.ne.s32.totalorder %s235_s16, %s1274_s10  ;;  %p1283_p5 = scmp.lt.s32.totalorder %s1274_s10, %s1274_s10 }
  0x2f   : > { %p1277_p13 = pnand %p1275_p1, %p1213_p12  ;;  %p1284_p10 = por %p1283_p5, %p1282_p3 }
  0x31   : > { %p1278_p0 = pneg %p1277_p13 }
  0x33   : > { %p1285_p7 = pnand %p1284_p10, %p1278_p0 }
  0x35   : > { %1288 = shalt.err (!%p1285_p7)
}
  0x36   : > { %1103 = dma.hbm_to_vmem [thread:$0]  (!%p1518_p11), %s1737_s2, 64, %s235_s16, [#allocation6]  }
  0x37   : > { %s1422_s14 = smov [#allocation10]  }
  0x38   : > { %s260_s15 = sshll.u32 %s1422_s14, 4  ;;  %s261_s15 = int_to_ptr.vmem [resolvable:$true] %s260_s15 }
  0x39   : > { %s1300_s17 = scalar_lea.vmem %s261_s15, 1024  ;;  %p1308_p2 = scmp.lt.s32.totalorder %s261_s15, %s261_s15 }
  0x3a   : > { %p1301_p9 = scmp.ne.s32.totalorder %s261_s15, %s1300_s17  ;;  %p1309_p3 = scmp.lt.s32.totalorder %s1300_s17, %s1300_s17 }
  0x3c   : > { %p1303_p1 = pnand %p1301_p9, %p1213_p12  ;;  %p1310_p0 = por %p1309_p3, %p1308_p2 }
  0x3e   : > { %p1304_p13 = pneg %p1303_p1 }
  0x40   : > { %p1311_p5 = pnand %p1310_p0, %p1304_p13 }
  0x42   : > { %1314 = shalt.err (!%p1311_p5)
}
  0x43   : > { %1109 = dma.hbm_to_vmem [thread:$0]  (!%p1518_p11), %s1740_s5, 1024, %s261_s15, [#allocation9], %s1744_s18, %s1744_s18, %s1745_s19  }
  0x44   : > { %s1566_s21 = sadd.s32 1, %s1415_s27   ;;  %s32_s12 = sadd.s32 1, %s1411_s26 }
  0x45   : > { %s29_s22 = ssub.s32 %s1415_s27, %s1566_s21  ;;  %p39_p2 = scmp.ne.s32.totalorder %s1411_s26, %s1407_s25 }
  0x46   : > { %p30_p12 = scmp.eq.s32.totalorder %s29_s22, 0  ;;  %p40_p10 = scmp.eq.s32.totalorder %s1415_s27, 0 }
  0x47   : > { %p1755_p7 = scmp.eq.s32.totalorder %s1490_s28, 1  ;;  %p1122_p1 = scmp.lt.s32.totalorder %s1415_s27, 2 }
  0x48   : > { %s1582_s29 = scalar_select %p30_p12, %s1411_s26, %s32_s12  }
  0x49   : > { %p1576_p9 = por %p1755_p7, %p39_p2  ;;  %p41_p13 = por %p40_p10, %p39_p2 }
  0x4a   : > { %s277_s10 = sand.u32 1, %s1411_s26   ;;  %s988_s13 = sshll.u32 %s1415_s27, 7 }
  0x4b   : > { %s1756_s23 = scalar_select %p1576_p9, 1, 0 }
  0x4c   : > { %s941_s11 = sshll.u32 %s277_s10, 3  ;;  %s1589_s17 = scalar_lea.hbm %s1735_s0, %s988_s13 }
  0x4d   : > { %s281_s16 = scalar_lea.vmem [#allocation2], %s941_s11  ;;  %p1593_p11 = pnand %p1122_p1, %p41_p13 }
  0x4e   : > { %s288_s20 = sshll.u32 %s281_s16, 4  ;;  %s1597_s12 = scalar_lea.sflag [#allocation3], %s277_s10  ;;  %s1591_s20 = int_to_ptr.vmem [resolvable:$true] %s288_s20 }
  0x4f   : > { %s1315_s18 = scalar_lea.hbm %s1589_s17, 128  ;;  %p1317_p0 = pneg %p1593_p11 }
  0x50   : > { %p1316_p3 = scmp.ne.s32.totalorder %s1589_s17, %s1315_s18  ;;  %s1320_s11 = scalar_lea.hbm %s1735_s0, 256 }
  0x51   : > { %p1321_p12 = scmp.lt.s32.totalorder %s1589_s17, %s1735_s0  ;;  %p1322_p10 = scmp.lt.s32.totalorder %s1320_s11, %s1315_s18 }
  0x52   : > { %p1318_p5 = pnand %p1317_p0, %p1316_p3 }
  0x53   : > { %p1323_p7 = por %p1322_p10, %p1321_p12 }
  0x54   : > { %p1319_p2 = pneg %p1318_p5 }
  0x56   : > { %p1324_p1 = pnand %p1323_p7, %p1319_p2 }
  0x58   : > { %1327 = shalt.err (!%p1324_p1)
}
  0x59   : > { %s1328_s10 = scalar_lea.vmem %s1591_s20, 128  ;;  %s1423_s19 = smov [#allocation2]  }
  0x5a   : > { %p1329_p13 = scmp.ne.s32.totalorder %s1591_s20, %s1328_s10  ;;  %s1333_s1 = sshll.u32 %s1423_s19, 4  ;;  %s1334_s1 = int_to_ptr.vmem [resolvable:$false] %s1333_s1 }
  0x5b   : > { %s1335_s13 = scalar_lea.vmem %s1334_s1, 256  ;;  %p1336_p5 = scmp.lt.s32.totalorder %s1591_s20, %s1334_s1 }
  0x5c   : > { %p1331_p6 = pnand %p1329_p13, %p1317_p0  ;;  %p1337_p9 = scmp.lt.s32.totalorder %s1335_s13, %s1328_s10 }
  0x5e   : > { %p1332_p3 = pneg %p1331_p6  ;;  %p1338_p4 = por %p1337_p9, %p1336_p5 }
  0x60   : > { %p1339_p8 = pnand %p1338_p4, %p1332_p3 }
  0x62   : > { %1342 = shalt.err (!%p1339_p8)
}
  0x63   : > { %s1758_s18 = smov 4   ;;  %s1759_s14 = smov 64  }
  0x64   : > { %1113 = dma.hbm_to_vmem [thread:$0]  (!%p1593_p11), %s1589_s17, 128, %s1591_s20, %s1597_s12, %s1759_s14, %s1759_s14, %s1758_s18  }
  0x65   : > { %p1760_p6 = scmp.ne.s32.totalorder %s1752_s9, 0 }
  0x66   : > { %s1624_s19 = sand.u32 (!%p1760_p6), 1, %s1407_s25   ;;  %p1761_p4 = scmp.ne.s32.totalorder (!%p1760_p6), %s1750_s30, 0 }
  0x67   : > { %300 = sbr.rel (%p1760_p6) target bundleno = 1432 (0x598), region = 48  ;;  %s945_s1 = sshll.u32 (!%p1760_p6), %s1624_s19, 3 }
  0x68   : > { %s303_s11 = scalar_lea.sflag (!%p1760_p6), [#allocation3], %s1624_s19  ;;  %s1628_s15 = scalar_lea.vmem (!%p1760_p6), [#allocation2], %s945_s1 }
  0x6c   : > { %1386 = dma.done.wait (%p1761_p4), %s303_s11, 128  }
  0x6d   : > { %1388 = vsyncadd (%p1761_p4), %s303_s11, 4294967168  ;;  %p1762_p8 = scmp.eq.s32.totalorder %s1490_s28, 0 }
  0x6f   : > { %1390 = dma.done.wait (%p1762_p8), [#allocation6], 1088   ;;  %p1763_p9 = pmov %p1762_p8 }
  0x70   : > { %p1764_p11 = pmov %p1762_p8 }
  0x71   : > { %1392 = vsyncadd (%p1763_p9), [#allocation6], 4294966208 }
  0x72   : > { %1394 = dma.done.wait (%p1764_p11), [#allocation9], 2048   ;;  %p1765_p0 = pmov %p1762_p8 }
  0x73   : > { %v1424_v0 = vmov 0.0   ;;  %vm1425_vm0 = vmmov 0   ;;  %v1170_v1 = vld [vmem:[#allocation5 + $0x38] sm:$0xff]   ;;  %v1171_v2 = vld [vmem:[#allocation5 + $0x30] sm:$0xff]   ;;  %v1172_v3 = vld [vmem:[#allocation5 + $0x28] sm:$0xff]   ;;  %s950_s16 = sshll.u32 %s1624_s19, 4 }
  0x74   : > { %1396 = vsyncadd (%p1765_p0), [#allocation9], 4294965248  ;;  %1017 = vmatprep.subr.bf16.mxu0 %v1424_v0  ;;  %1033 = vmatprep.mubr.msk.bf16.mxu0 %vm1425_vm0, %v1424_v0  ;;  %v1173_v4 = vld [vmem:[#allocation5 + $0x20] sm:$0xff]   ;;  %v1174_v5 = vld [vmem:[#allocation5 + $0x18] sm:$0xff]   ;;  %s352_s18 = scalar_lea.vmem [#allocation11], %s950_s16  ;;  %s989_s1 = sshll.u32 %s1490_s28, 8 }
  0x75   : > { %1037 = vmatprep.subr.bf16.mxu1 %v1424_v0  ;;  %1053 = vmatprep.mubr.msk.bf16.mxu1 %vm1425_vm0, %v1424_v0  ;;  %v1175_v6 = vld [vmem:[#allocation5 + $0x10] sm:$0xff]   ;;  %v1176_v7 = vld [vmem:[#allocation5 + $0x8] sm:$0xff]   ;;  %v1177_v8 = vld [vmem:[#allocation5] sm:$0xff]   ;;  %s823_s14 = sshll.u32 %s352_s18, 4  ;;  %s1692_s30 = scalar_lea.hbm %s1742_s7, %s989_s1  ;;  %s1687_s14 = int_to_ptr.vmem [resolvable:$true] %s823_s14 }
  0x76   : > { %1018 = vmatpush3.bf16.msra.mxu0 %v1170_v1  ;;  %v1178_v9 = vld [vmem:[%s1628_s15] sm:$0xff]   ;;  %v951_v10 = vld [vmem:[#allocation7] ss:$0 sm:$0xff]  ;;  %v1182_v28 = vld [vmem:[#allocation8 + $0x20] sm:$0xff]   ;;  %s810_s9 = scalar_lea.sflag [#allocation4], %s1624_s19  ;;  %s1343_s17 = scalar_lea.vmem %s1687_s14, 256 }
  0x77   : > { %1019 = vmatprep.subr.bf16.mxu0 %v1424_v0  ;;  %v1179_v25 = vld [vmem:[#allocation8 + $0x38] sm:$0xff]   ;;  %v1180_v26 = vld [vmem:[#allocation8 + $0x30] sm:$0xff]   ;;  %v1181_v27 = vld [vmem:[#allocation8 + $0x28] sm:$0xff]   ;;  %p1344_p2 = scmp.ne.s32.totalorder %s1687_s14, %s1343_s17  ;;  %p1766_p12 = scmp.ne.s32.totalorder %s1756_s23, 0 }
  0x78   : > { %1038 = vmatpush3.bf16.msra.mxu1 %v1179_v25  ;;  %v1183_v29 = vld [vmem:[#allocation8 + $0x18] sm:$0xff]   ;;  %v1184_v30 = vld [vmem:[#allocation8 + $0x10] sm:$0xff]   ;;  %v1185_v31 = vld [vmem:[#allocation8 + $0x8] sm:$0xff]   ;;  %s1426_s28 = smov [#allocation11]  }
  0x79   : > { %1039 = vmatprep.subr.bf16.mxu1 %v1424_v0  ;;  %v1186_v32 = vld [vmem:[#allocation8] sm:$0xff]   ;;  %v961_v40 = vld [vmem:[#allocation7 + $0x1] ss:$0 sm:$0xff]  ;;  %v962_v42 = vld [vmem:[#allocation7 + $0x2] ss:$0 sm:$0xff]  ;;  %p1345_p10 = pnand %p1344_p2, %p1766_p12  ;;  %s1347_s20 = sshll.u32 %s1426_s28, 4  ;;  %s1348_s20 = int_to_ptr.vmem [resolvable:$false] %s1347_s20 }
  0x7a   : > { %1020 = vmatpush3.bf16.msra.mxu0 %v1171_v2  ;;  %v1192_v25 = vld [vmem:[#allocation10 + $0x10] sm:$0xff]   ;;  %s1349_s22 = scalar_lea.vmem %s1348_s20, 512  ;;  %p1350_p1 = scmp.lt.s32.totalorder %s1687_s14, %s1348_s20 }
  0x7b   : > { %1021 = vmatprep.subr.bf16.mxu0 %v1424_v0  ;;  %p1346_p7 = pneg %p1345_p10  ;;  %p1351_p13 = scmp.lt.s32.totalorder %s1349_s22, %s1343_s17 }
  0x7c   : > { %1040 = vmatpush3.bf16.msra.mxu1 %v1180_v26  ;;  %v1193_v26 = vld [vmem:[#allocation10 + $0x8] sm:$0xff]  }
  0x7d   : > { %1041 = vmatprep.subr.bf16.mxu1 %v1424_v0  ;;  %p1352_p3 = por %p1351_p13, %p1350_p1 }
  0x7e   : > { %1022 = vmatpush3.bf16.msra.mxu0 %v1172_v3 }
  0x7f   : > { %1023 = vmatprep.subr.bf16.mxu0 %v1424_v0  ;;  %p1353_p5 = pnand %p1352_p3, %p1346_p7 }
  0x80   : > { %1042 = vmatpush3.bf16.msra.mxu1 %v1181_v27  ;;  %v1194_v27 = vld [vmem:[#allocation10] sm:$0xff]  }
  0x81   : > { %1043 = vmatprep.subr.bf16.mxu1 %v1424_v0 }
  0x82   : > { %1024 = vmatpush3.bf16.msra.mxu0 %v1173_v4 }
  0x83   : > { %1025 = vmatprep.subr.bf16.mxu0 %v1424_v0 }
  0x84   : > { %1044 = vmatpush3.bf16.msra.mxu1 %v1182_v28 }
  0x85   : > { %1045 = vmatprep.subr.bf16.mxu1 %v1424_v0 }
  0x86   : > { %1026 = vmatpush3.bf16.msra.mxu0 %v1174_v5  ;;  %v963_v5 = vld [vmem:[%s1739_s4] ss:$0 sm:$0xff] }
  0x87   : > { %1027 = vmatprep.subr.bf16.mxu0 %v1424_v0 }
  0x88   : > { %1046 = vmatpush3.bf16.msra.mxu1 %v1183_v29 }
  0x89   : > { %1047 = vmatprep.subr.bf16.mxu1 %v1424_v0 }
  0x8a   : > { %1028 = vmatpush3.bf16.msra.mxu0 %v1175_v6 }
  0x8b   : > { %1029 = vmatprep.subr.bf16.mxu0 %v1424_v0 }
  0x8c   : > { %1048 = vmatpush3.bf16.msra.mxu1 %v1184_v30 }
  0x8d   : > { %1049 = vmatprep.subr.bf16.mxu1 %v1424_v0 }
  0x8e   : > { %1030 = vmatpush3.bf16.msra.mxu0 %v1176_v7 }
  0x8f   : > { %1031 = vmatprep.subr.bf16.mxu0 %v1424_v0 }
  0x90   : > { %1050 = vmatpush3.bf16.msra.mxu1 %v1185_v31 }
  0x91   : > { %1051 = vmatprep.subr.bf16.mxu1 %v1424_v0 }
  0x92   : > { %1032 = vmatpush3.bf16.msra.mxu0 %v1177_v8 }
  0x93   : > { %1057 = vmatprep.subr.bf16.mxu0 %v1424_v0 }
  0x94   : > { %1052 = vmatpush3.bf16.msra.mxu1 %v1186_v32 }
  0x95   : > { %1034 = vmatmul.mubr.bf16.vlgmr.msra.gmra.mxu0 %v1178_v9 }
  0x96   : > { %1073 = vmatprep.mubr.msk.bf16.mxu0 %vm1425_vm0, %v1424_v0 }
 0x155   : > { %v467_v11 = vpop.f32.mrf.mxu0 }
 0x156   : > { %v468_v12 = vadd.f32 %v951_v10, %v467_v11 }
 0x157   : > { %v1035_v13 = vpop.f32.mrf.mxu0 }
 0x158   : > { %476 = vadd.xlane.f32.xlu0 %v468_v12 }
 0x159   : > { %v470_v14 = vpop.f32.mrf.mxu0 }
 0x15a   : > { %v471_v15 = vadd.f32 %v951_v10, %v470_v14 }
 0x15b   : > { %v1036_v16 = vpop.f32.mrf.mxu0 }
 0x15c   : > { %478 = vadd.xlane.f32.xlu0 %v471_v15 }
 0x1e1   : > { %v477_v17 = vpop.xlane.xlu0 %476 }
 0x1e2   : > { %v481_v18 = vmul.f32 0.0078125, %v477_v17 }
 0x1e4   : > { %v483_v19 = vsub.f32 %v468_v12, %v481_v18 }
 0x1e5   : > { %v479_v20 = vpop.xlane.xlu0 %478 }
 0x1e6   : > { %v482_v21 = vmul.f32 0.0078125, %v479_v20  ;;  %v485_v22 = vmul.f32 %v483_v19, %v483_v19  ;;  %v1187_v20 = vld [vmem:[#allocation10 + $0x38] sm:$0xff]  }
 0x1e7   : > { %1058 = vmatpush3.bf16.msra.mxu0 %v1187_v20 }
 0x1e8   : > { %v484_v23 = vsub.f32 %v471_v15, %v482_v21  ;;  %487 = vadd.xlane.f32.xlu1 %v485_v22  ;;  %v1188_v21 = vld [vmem:[#allocation10 + $0x30] sm:$0xff]   ;;  %1059 = vmatprep.subr.bf16.mxu0 %v1424_v0  ;;  %v1189_v22 = vld [vmem:[#allocation10 + $0x28] sm:$0xff]  }
 0x1ea   : > { %v486_v24 = vmul.f32 %v484_v23, %v484_v23 }
 0x1eb   : > { %1060 = vmatpush3.bf16.msra.mxu0 %v1188_v21 }
 0x1ec   : > { %489 = vadd.xlane.f32.xlu1 %v486_v24  ;;  %1061 = vmatprep.subr.bf16.mxu0 %v1424_v0  ;;  %v1191_v24 = vld [vmem:[#allocation10 + $0x18] sm:$0xff]  }
 0x1ef   : > { %1062 = vmatpush3.bf16.msra.mxu0 %v1189_v22 }
 0x1f0   : > { %1063 = vmatprep.subr.bf16.mxu0 %v1424_v0 }
 0x271   : > { %v488_v33 = vpop.xlane.xlu1 %487 }
 0x272   : > { %v491_v34 = vmul.f32 0.0078125, %v488_v33 }
 0x274   : > { %v493_v35 = vadd.f32 1e-05, %v491_v34 }
 0x275   : > { %v490_v36 = vpop.xlane.xlu1 %489 }
 0x276   : > { %1195 = vrsqrt.f32 %v493_v35  ;;  %v492_v37 = vmul.f32 0.0078125, %v490_v36  ;;  %v972_v35 = vld [vmem:[%s1739_s4 + $0x1] ss:$0 sm:$0xff] }
 0x278   : > { %v494_v38 = vadd.f32 1e-05, %v492_v37  ;;  %v973_v37 = vld [vmem:[%s1739_s4 + $0x2] ss:$0 sm:$0xff] }
 0x27a   : > { %1197 = vrsqrt.f32 %v494_v38 }
 0x283   : > { %v1196_v39 = vpop.eup %1195 }
 0x284   : > { %v497_v41 = vmul.f32 %v1196_v39, %v483_v19 }
 0x286   : > { %v503_v43 = vmul.f32 %v961_v40, %v497_v41 }
 0x287   : > { %v1198_v44 = vpop.eup %1197 }
 0x288   : > { %v498_v45 = vmul.f32 %v1198_v44, %v484_v23  ;;  %v509_v46 = vadd.f32 %v962_v42, %v503_v43  ;;  %v1190_v23 = vld [vmem:[#allocation10 + $0x20] sm:$0xff]  }
 0x289   : > { %1064 = vmatpush3.bf16.msra.mxu0 %v1190_v23 }
 0x28a   : > { %v504_v47 = vmul.f32 %v961_v40, %v498_v45  ;;  %v513_v48 = vmul.f32 %v509_v46, %v509_v46  ;;  %v511_v62 = vmul.f32 0.5, %v509_v46  ;;  %1065 = vmatprep.subr.bf16.mxu0 %v1424_v0 }
 0x28c   : > { %v510_v49 = vadd.f32 %v962_v42, %v504_v47  ;;  %v515_v50 = vmul.f32 %v513_v48, %v509_v46 }
 0x28d   : > { %1066 = vmatpush3.bf16.msra.mxu0 %v1191_v24 }
 0x28e   : > { %v514_v51 = vmul.f32 %v510_v49, %v510_v49  ;;  %v517_v52 = vmul.f32 0.044715, %v515_v50  ;;  %v512_v63 = vmul.f32 0.5, %v510_v49  ;;  %1067 = vmatprep.subr.bf16.mxu0 %v1424_v0 }
 0x290   : > { %v516_v53 = vmul.f32 %v514_v51, %v510_v49  ;;  %v519_v54 = vadd.f32 %v517_v52, %v509_v46 }
 0x291   : > { %1068 = vmatpush3.bf16.msra.mxu0 %v1192_v25 }
 0x292   : > { %v518_v55 = vmul.f32 0.044715, %v516_v53  ;;  %v521_v56 = vmul.f32 0.7978846, %v519_v54  ;;  %1069 = vmatprep.subr.bf16.mxu0 %v1424_v0 }
 0x294   : > { %v520_v57 = vadd.f32 %v518_v55, %v510_v49  ;;  %1199 = vtanh.f32 %v521_v56 }
 0x295   : > { %1070 = vmatpush3.bf16.msra.mxu0 %v1193_v26 }
 0x296   : > { %v522_v58 = vmul.f32 0.7978846, %v520_v57  ;;  %1071 = vmatprep.subr.bf16.mxu0 %v1424_v0 }
 0x298   : > { %1201 = vtanh.f32 %v522_v58 }
 0x299   : > { %1072 = vmatpush3.bf16.msra.mxu0 %v1194_v27 }
 0x2a1   : > { %v1200_v59 = vpop.eup %1199 }
 0x2a2   : > { %v525_v60 = vadd.f32 1.0, %v1200_v59 }
 0x2a4   : > { %v527_v2 = vmul.f32 %v525_v60, %v511_v62  ;;  %v974_v62 = vld [vmem:[%s1741_s6] ss:$0 sm:$0xff] }
 0x2a5   : > { %v1202_v61 = vpop.eup %1201 }
 0x2a6   : > { %v526_v1 = vadd.f32 1.0, %v1202_v61 }
 0x2a8   : > { %v528_v3 = vmul.f32 %v526_v1, %v512_v63 }
 0x2aa   : > { %v529_v4 = vpack.c.bf16 %v528_v3, %v527_v2 }
 0x2ac   : > { %1054 = vmatmul.mubr.bf16.vlgmr.msra.gmra.mxu1 %v529_v4 }
 0x36c   : > { %v633_v6 = vpop.f32.mrf.mxu1 }
 0x36d   : > { %v634_v7 = vadd.f32 %v963_v5, %v633_v6 }
 0x36e   : > { %v1055_v8 = vpop.f32.mrf.mxu1 }
 0x36f   : > { %642 = vadd.xlane.f32.xlu0 %v634_v7 }
 0x370   : > { %v636_v9 = vpop.f32.mrf.mxu1 }
 0x371   : > { %v637_v10 = vadd.f32 %v963_v5, %v636_v9 }
 0x372   : > { %v1056_v11 = vpop.f32.mrf.mxu1 }
 0x373   : > { %644 = vadd.xlane.f32.xlu1 %v637_v10 }
 0x3f8   : > { %v643_v12 = vpop.xlane.xlu0 %642 }
 0x3f9   : > { %v646_v13 = vmul.f32 0.0078125, %v643_v12 }
 0x3fb   : > { %v648_v14 = vsub.f32 %v634_v7, %v646_v13 }
 0x3fc   : > { %v645_v15 = vpop.xlane.xlu1 %644 }
 0x3fd   : > { %v647_v16 = vmul.f32 0.0078125, %v645_v15  ;;  %v650_v17 = vmul.f32 %v648_v14, %v648_v14 }
 0x3ff   : > { %v649_v18 = vsub.f32 %v637_v10, %v647_v16  ;;  %652 = vadd.xlane.f32.xlu0 %v650_v17 }
 0x401   : > { %v651_v19 = vmul.f32 %v649_v18, %v649_v18 }
 0x403   : > { %654 = vadd.xlane.f32.xlu1 %v651_v19 }
 0x488   : > { %v653_v28 = vpop.xlane.xlu0 %652 }
 0x489   : > { %v656_v29 = vmul.f32 0.0078125, %v653_v28 }
 0x48b   : > { %v658_v30 = vadd.f32 1e-05, %v656_v29 }
 0x48c   : > { %v655_v31 = vpop.xlane.xlu1 %654 }
 0x48d   : > { %1203 = vrsqrt.f32 %v658_v30  ;;  %v657_v32 = vmul.f32 0.0078125, %v655_v31 }
 0x48f   : > { %v659_v33 = vadd.f32 1e-05, %v657_v32 }
 0x491   : > { %1205 = vrsqrt.f32 %v659_v33 }
 0x49a   : > { %v1204_v34 = vpop.eup %1203 }
 0x49b   : > { %v662_v36 = vmul.f32 %v1204_v34, %v648_v14 }
 0x49d   : > { %v668_v0 = vmul.f32 %v972_v35, %v662_v36 }
 0x49e   : > { %v1206_v38 = vpop.eup %1205 }
 0x49f   : > { %v674_v39 = vadd.f32 %v973_v37, %v668_v0  ;;  %v663_v40 = vmul.f32 %v1206_v38, %v649_v18 }
 0x4a1   : > { %v669_v41 = vmul.f32 %v972_v35, %v663_v40  ;;  %v678_v42 = vmul.f32 %v674_v39, %v674_v39  ;;  %v676_v56 = vmul.f32 0.5, %v674_v39 }
 0x4a3   : > { %v675_v43 = vadd.f32 %v973_v37, %v669_v41  ;;  %v680_v44 = vmul.f32 %v678_v42, %v674_v39 }
 0x4a5   : > { %v679_v45 = vmul.f32 %v675_v43, %v675_v43  ;;  %v682_v46 = vmul.f32 0.044715, %v680_v44  ;;  %v677_v57 = vmul.f32 0.5, %v675_v43 }
 0x4a7   : > { %v681_v47 = vmul.f32 %v679_v45, %v675_v43  ;;  %v684_v48 = vadd.f32 %v682_v46, %v674_v39 }
 0x4a9   : > { %v683_v49 = vmul.f32 0.044715, %v681_v47  ;;  %v686_v50 = vmul.f32 0.7978846, %v684_v48 }
 0x4ab   : > { %v685_v51 = vadd.f32 %v683_v49, %v675_v43  ;;  %1207 = vtanh.f32 %v686_v50 }
 0x4ad   : > { %v687_v52 = vmul.f32 0.7978846, %v685_v51 }
 0x4af   : > { %1209 = vtanh.f32 %v687_v52 }
 0x4b8   : > { %v1208_v53 = vpop.eup %1207 }
 0x4b9   : > { %v690_v54 = vadd.f32 1.0, %v1208_v53 }
 0x4bb   : > { %v692_v59 = vmul.f32 %v690_v54, %v676_v56 }
 0x4bc   : > { %v1210_v55 = vpop.eup %1209 }
 0x4bd   : > { %v691_v58 = vadd.f32 1.0, %v1210_v55 }
 0x4bf   : > { %v693_v60 = vmul.f32 %v691_v58, %v677_v57 }
 0x4c1   : > { %v694_v61 = vpack.c.bf16 %v693_v60, %v692_v59 }
 0x4c3   : > { %1074 = vmatmul.mubr.bf16.vlgmr.msra.gmra.mxu0 %v694_v61 }
 0x583   : > { %v800_v63 = vpop.f32.mrf.mxu0 }
 0x584   : > { %v801_v1 = vadd.f32 %v974_v62, %v800_v63 }
 0x585   : > { %v1075_v2 = vpop.f32.mrf.mxu0 }
 0x586   : > { %807 = vst [vmem:[%s352_s18] sm:$0xff] %v801_v1 }
 0x587   : > { %v803_v3 = vpop.f32.mrf.mxu0 }
 0x588   : > { %v804_v4 = vadd.f32 %v974_v62, %v803_v3 }
 0x589   : > { %v1076_v5 = vpop.f32.mrf.mxu0 }
 0x58a   : > { %808 = vst [vmem:[%s352_s18 + $0x8] sm:$0xff] %v804_v4 }
 0x58b   : > { %1356 = shalt.err (!%p1353_p5)
}
 0x58c   : > { %s1357_s12 = scalar_lea.hbm %s1692_s30, 256  ;;  %s1361_s13 = scalar_lea.hbm %s1742_s7, 512 }
 0x58d   : > { %p1358_p6 = scmp.ne.s32.totalorder %s1692_s30, %s1357_s12  ;;  %p1362_p9 = scmp.lt.s32.totalorder %s1692_s30, %s1742_s7 }
 0x58e   : > { %p1363_p11 = scmp.lt.s32.totalorder %s1361_s13, %s1357_s12 }
 0x58f   : > { %p1359_p4 = pnand %p1358_p6, %p1766_p12 }
 0x590   : > { %p1364_p0 = por %p1363_p11, %p1362_p9 }
 0x591   : > { %p1360_p8 = pneg %p1359_p4 }
 0x593   : > { %p1365_p2 = pnand %p1364_p0, %p1360_p8 }
 0x595   : > { %1368 = shalt.err (!%p1365_p2)
}
 0x596   : > { %s1427_s11 = smov 128   ;;  %s1428_s15 = smov 8  }
 0x597   : > { %1095 = dma.vmem_to_hbm [thread:$0]  (%p1766_p12), %s1687_s14, 256, %s1692_s30, %s810_s9, %s1427_s11, %s1427_s11, %s1428_s15  }
 0x598 PF: > { %s838_s17 = sand.u32 1, %s1403_s24   ;;  %p1767_p10 = scmp.ne.s32.totalorder %s1751_s8, 0 }
 0x599   : > { %p1768_p7 = scmp.ge.s32.totalorder %s1415_s27, 2  ;;  %s839_s28 = scalar_lea.sflag [#allocation4], %s838_s17 }
 0x59b   : > { %p1115_p1 = pnand %p1768_p7, %p1767_p10 }
 0x59d   : > { %p1116_p13 = pneg %p1115_p1 }
 0x59f   : > { %1398 = dma.done.wait (%p1116_p13), %s839_s28, 256  }
 0x5a0   : > { %1400 = vsyncadd (%p1116_p13), %s839_s28, 4294967040  ;;  %p22_p3 = scmp.ge.s32.totalorder %s1566_s21, 4   ;;  %s1769_s24 = smov %s1407_s25 }
 0x5a1   : > { %s1770_s25 = smov %s1411_s26  ;;  %s1771_s26 = smov %s1582_s29 }
 0x5a2   : > { %s1772_s27 = smov %s1566_s21  ;;  %24 = sbr.rel (!%p22_p3) target bundleno = 9 (0x9), region = 109 }
 0x5a7   :  { %844 = vsyncpa [#allocation3], 1 }
 0x5a8   :  { %846 = vsyncpa [#allocation3 + $0x1], 1 }
 0x5a9   :  { %847 = vsyncpa [#allocation6], 1 }
 0x5aa   :  { %848 = vsyncpa [#allocation9], 1 }
 0x5ab   :  { %849 = vsyncpa [#allocation4], 1 }
 0x5ac   :  { %851 = vsyncpa [#allocation4 + $0x1], 1 }

</bundles_post_ra>
